<compile_context>
chip_gen: v7x
topology: tpu7x:2x2x1
jax: 0.10.0
libtpu: 0.0.40
codegen_flags: <defaults>
</compile_context>

<pallas_src>
import functools

import jax
import jax.numpy as jnp
from jax import lax
from jax.experimental import pallas as pl
from jax.experimental.pallas import tpu as pltpu


def _round_up(x, m):
    return ((x + m - 1) // m) * m


def _inner_product_kernel(num_nodes_ref, q_ref, k_ref, out_ref):
    # num_nodes_ref: SMEM [B] int32 (scalar prefetch)
    # q_ref: [TM, D], k_ref: [TN, D], out_ref: [TM, TN]
    b = pl.program_id(0)
    i = pl.program_id(1)
    j = pl.program_id(2)
    tm, tn = out_ref.shape
    n_b = num_nodes_ref[b]

    valid = jnp.logical_and(i * tm < n_b, j * tn < n_b)

    @pl.when(valid)
    def _():
        # q @ k.T without materializing a transposed k tile (contract on dim 1
        # of both operands -> no in-kernel XLU transpose).  f32 accumulation.
        out_ref[...] = lax.dot_general(
            q_ref[...], k_ref[...],
            dimension_numbers=(((1,), (1,)), ((), ())),
            preferred_element_type=jnp.float32,
        ).astype(out_ref.dtype)

    @pl.when(jnp.logical_not(valid))
    def _():
        # Tile lies entirely in the padding region -> zeros (skips MXU work;
        # the HBM store still happens, which is the true cost here).
        out_ref[...] = jnp.zeros_like(out_ref)


def _select_tile_and_vmem(n_pad, d, in_itemsize, out_itemsize):
    """Generation-aware tile cap and VMEM limit."""
    vmem_bytes = None
    try:
        info = pltpu.get_tpu_info()
        for attr in ("vmem_capacity_bytes", "vmem_bytes", "vmem_capacity"):
            v = getattr(info, attr, None)
            if isinstance(v, int) and v > 0:
                vmem_bytes = v
                break
    except Exception:
        vmem_bytes = None
    if vmem_bytes is None:
        vmem_bytes = 64 << 20  # conservative: assume v7x-sized VMEM per TC

    big_vmem = vmem_bytes >= (96 << 20)          # v5e / v6e (128 MiB)
    cap_tile = 2048 if big_vmem else 1024        # never 2048 on 64-MiB v7x
    vmem_cap = (88 << 20) if big_vmem else (40 << 20)

    # n_pad is a multiple of 128 only (never rounded up to the tile).  Pick the
    # largest tile <= cap that divides n_pad so grids stay exact and the N^2
    # output write is never inflated.  Worst case (n_pad/128 prime) -> 128.
    if n_pad <= cap_tile:
        tile = n_pad
    else:
        tile = 128
        t = cap_tile
        while t >= 128:
            if n_pad % t == 0:
                tile = t
                break
            t -= 128

    # Double-buffered out tile + q tile + k tile, plus headroom.
    step_bytes = 2 * (tile * tile * out_itemsize + 2 * tile * d * in_itemsize)
    vmem_limit = int(min(vmem_cap, max(16 << 20, step_bytes + (4 << 20))))
    return tile, vmem_limit


@functools.partial(jax.jit, static_argnums=(1, 2, 3, 4, 5, 6, 7))
def _decode(batched_h, batch_num_nodes, n_max, n_pad, tile, vmem_limit,
            out_dtype, return_padded):
    B = len(batch_num_nodes)
    D = batched_h.shape[-1]
    in_dtype = batched_h.dtype

    # torch.split + pad_sequence(batch_first=True) as B contiguous slice
    # updates (no scatter lowering).  Padding rows are exactly zero, which the
    # boundary tiles rely on.
    padded = jnp.zeros((B, n_pad, D), dtype=in_dtype)
    off = 0
    for b, n in enumerate(batch_num_nodes):
        padded = lax.dynamic_update_slice(
            padded, batched_h[off:off + n][None, :, :], (b, 0, 0))
        off += n

    num_nodes = jnp.asarray(batch_num_nodes, dtype=jnp.int32)

    grid = (B, n_pad // tile, n_pad // tile)

    in_itemsize = jnp.dtype(in_dtype).itemsize
    out_itemsize = jnp.dtype(out_dtype).itemsize
    cost = pl.CostEstimate(
        flops=2 * B * n_pad * n_pad * D,
        transcendentals=0,
        bytes_accessed=int(2 * B * n_pad * D * in_itemsize
                           + B * n_pad * n_pad * out_itemsize),
    )

    inst_full = pl.pallas_call(
        _inner_product_kernel,
        out_shape=jax.ShapeDtypeStruct((B, n_pad, n_pad), out_dtype),
        grid_spec=pltpu.PrefetchScalarGridSpec(
            num_scalar_prefetch=1,
            grid=grid,
            in_specs=[
                # q tile: rows i*tile.. of graph b (batch dim squeezed)
                pl.BlockSpec((None, tile, D), lambda b, i, j, nn: (b, i, 0)),
                # k tile: rows j*tile.. of graph b
                pl.BlockSpec((None, tile, D), lambda b, i, j, nn: (b, j, 0)),
            ],
            out_specs=pl.BlockSpec((None, tile, tile),
                                   lambda b, i, j, nn: (b, i, j)),
        ),
        compiler_params=pltpu.CompilerParams(
            # No reduction axis; all-parallel lets Mosaic shard across the two
            # TensorCores on v7x (no-op on v5e/v6e).
            dimension_semantics=("parallel", "parallel", "parallel"),
            vmem_limit_bytes=vmem_limit,
        ),
        cost_estimate=cost,
    )(num_nodes, padded, padded)

    if return_padded or n_max == n_pad:
        return inst_full
    # Exact pad_sequence size; padding rows/cols are zero.  The trim happens
    # inside this jitted program (consumers that accept the 128-rounded output
    # should pass return_padded=True to skip it entirely).
    return inst_full[:, :n_max, :n_max]


def inner_product_decoder(batched_h, batch_num_nodes, *,
                          out_dtype=None, return_padded=False):
    """batched_h: [total_nodes, D]; batch_num_nodes: per-graph node counts.

    Returns (inst_out [B, n_max, n_max] (or [B, n_pad, n_pad] if
    return_padded), feat_out == []).
    """
    batch_num_nodes = tuple(int(n) for n in batch_num_nodes)
    D = int(batched_h.shape[-1])
    n_max = max(batch_num_nodes)
    n_pad = _round_up(n_max, 128)           # lane-dense; never rounded to tile

    out_dtype = jnp.dtype(batched_h.dtype if out_dtype is None else out_dtype)
    tile, vmem_limit = _select_tile_and_vmem(
        n_pad, D, jnp.dtype(batched_h.dtype).itemsize, out_dtype.itemsize)

    inst_out = _decode(batched_h, batch_num_nodes, n_max, n_pad, tile,
                       vmem_limit, out_dtype, bool(return_padded))

    feat_out = []  # return_feat=False -> projector is None, empty list returned
    return inst_out, feat_out


if __name__ == "__main__":
    key = jax.random.PRNGKey(0)

    # Small synthetic "batched graph": 2 graphs with 6 and 8 nodes, hidden=32.
    batch_num_nodes = [6, 8]
    total_nodes = sum(batch_num_nodes)
    D = 32

    batched_h = jax.random.normal(key, (total_nodes, D), dtype=jnp.float32)

    inst_out, feat_out = inner_product_decoder(batched_h, batch_num_nodes)
    inst_out = jax.block_until_ready(inst_out)

    # Reference check (pure JAX): pad then einsum, exactly the torch semantics.
    B, n_max = len(batch_num_nodes), max(batch_num_nodes)
    ref_pad = jnp.zeros((B, n_max, D), dtype=jnp.float32)
    off = 0
    for b, n in enumerate(batch_num_nodes):
        ref_pad = ref_pad.at[b, :n, :].set(batched_h[off:off + n, :])
        off += n
    ref = jnp.einsum("bnd,bmd->bnm", ref_pad, ref_pad)

    assert inst_out.shape == (B, n_max, n_max)
    assert feat_out == []
    assert jnp.allclose(inst_out, ref, atol=1e-5, rtol=1e-5)

    print("KERNEL_OK")
</pallas_src>

<mosaic_0001>
module attributes {stable_mosaic.version = 11 : i64} {
  func.func @_inner_product_kernel(%arg0: i32, %arg1: i32, %arg2: i32, %arg3: memref<2xi32, #tpu.memory_space<smem>>, %arg4: memref<1x128x32xf32, #tpu.memory_space<vmem>>, %arg5: memref<1x128x32xf32, #tpu.memory_space<vmem>>, %arg6: memref<1x128x128xf32, #tpu.memory_space<vmem>>) attributes {dimension_semantics = [#tpu.dimension_semantics<parallel>, #tpu.dimension_semantics<parallel>, #tpu.dimension_semantics<parallel>], iteration_bounds = array<i64: 2, 1, 1>, scalar_prefetch = 1 : i64, scratch_operands = 0 : i64, tpu.core_type = #tpu.core_type<tc>, window_params = [{transform_indices = @transform_0, window_bounds = array<i64: 1, 128, 32>}, {transform_indices = @transform_1, window_bounds = array<i64: 1, 128, 32>}, {transform_indices = @transform_2, window_bounds = array<i64: 1, 128, 128>}]} {
    %0 = arith.index_cast %arg0 : i32 to index
    %1 = memref.load %arg3[%0] : memref<2xi32, #tpu.memory_space<smem>>
    %c128_i32 = arith.constant 128 : i32
    %2 = arith.muli %arg1, %c128_i32 : i32
    %3 = arith.cmpi slt, %2, %1 : i32
    %c128_i32_0 = arith.constant 128 : i32
    %4 = arith.muli %arg2, %c128_i32_0 : i32
    %5 = arith.cmpi slt, %4, %1 : i32
    %6 = arith.andi %3, %5 : i1
    %7 = arith.extui %6 : i1 to i32
    %c0_i32 = arith.constant 0 : i32
    %8 = arith.cmpi ne, %7, %c0_i32 : i32
    scf.if %8 {
      %c0 = arith.constant 0 : index
      %c0_2 = arith.constant 0 : index
      %c0_3 = arith.constant 0 : index
      %12 = vector.load %arg4[%c0, %c0_2, %c0_3] : memref<1x128x32xf32, #tpu.memory_space<vmem>>, vector<1x128x32xf32>
      %13 = vector.shape_cast %12 : vector<1x128x32xf32> to vector<128x32xf32>
      %c0_4 = arith.constant 0 : index
      %c0_5 = arith.constant 0 : index
      %c0_6 = arith.constant 0 : index
      %14 = vector.load %arg5[%c0_4, %c0_5, %c0_6] : memref<1x128x32xf32, #tpu.memory_space<vmem>>, vector<1x128x32xf32>
      %15 = vector.shape_cast %14 : vector<1x128x32xf32> to vector<128x32xf32>
      %cst = arith.constant dense<0.000000e+00> : vector<128x128xf32>
      %16 = tpu.matmul %13, %15, %cst {dimension_numbers = #tpu.dot_dimension_numbers<[1], [1], [0], [0], [0, 0, 1, 0], [], []>} : vector<128x32xf32>, vector<128x32xf32>, vector<128x128xf32> -> vector<128x128xf32>
      %c0_7 = arith.constant 0 : index
      %c0_8 = arith.constant 0 : index
      %c0_9 = arith.constant 0 : index
      %17 = vector.load %arg6[%c0_7, %c0_8, %c0_9] : memref<1x128x128xf32, #tpu.memory_space<vmem>>, vector<1x128x128xf32>
      %18 = vector.shape_cast %17 : vector<1x128x128xf32> to vector<128x128xf32>
      %19 = vector.shape_cast %16 : vector<128x128xf32> to vector<1x128x128xf32>
      tpu.vector_store %arg6[%c0_7, %c0_8, %c0_9], %19 {strides = array<i32>} : memref<1x128x128xf32, #tpu.memory_space<vmem>>, vector<1x128x128xf32>,
    } else {
    }
    %true = arith.constant true
    %9 = arith.xori %6, %true : i1
    %10 = arith.extui %9 : i1 to i32
    %c0_i32_1 = arith.constant 0 : i32
    %11 = arith.cmpi ne, %10, %c0_i32_1 : i32
    scf.if %11 {
      %cst = arith.constant 0.000000e+00 : f32
      %12 = vector.broadcast %cst : f32 to vector<128x128xf32>
      %c0 = arith.constant 0 : index
      %c0_2 = arith.constant 0 : index
      %c0_3 = arith.constant 0 : index
      %13 = vector.load %arg6[%c0, %c0_2, %c0_3] : memref<1x128x128xf32, #tpu.memory_space<vmem>>, vector<1x128x128xf32>
      %14 = vector.shape_cast %13 : vector<1x128x128xf32> to vector<128x128xf32>
      %15 = vector.shape_cast %12 : vector<128x128xf32> to vector<1x128x128xf32>
      tpu.vector_store %arg6[%c0, %c0_2, %c0_3], %15 {strides = array<i32>} : memref<1x128x128xf32, #tpu.memory_space<vmem>>, vector<1x128x128xf32>,
    } else {
    }
    return
  }
  func.func @transform_0(%arg0: i32, %arg1: i32, %arg2: i32, %arg3: memref<2xi32, #tpu.memory_space<smem>>) -> (i32, i32, i32) {
    %c0_i32 = arith.constant 0 : i32
    %c0_i32_0 = arith.constant 0 : i32
    return %arg0, %arg1, %c0_i32 : i32, i32, i32
  }
  func.func @transform_1(%arg0: i32, %arg1: i32, %arg2: i32, %arg3: memref<2xi32, #tpu.memory_space<smem>>) -> (i32, i32, i32) {
    %c0_i32 = arith.constant 0 : i32
    %c0_i32_0 = arith.constant 0 : i32
    return %arg0, %arg2, %c0_i32 : i32, i32, i32
  }
  func.func @transform_2(%arg0: i32, %arg1: i32, %arg2: i32, %arg3: memref<2xi32, #tpu.memory_space<smem>>) -> (i32, i32, i32) {
    %c0_i32 = arith.constant 0 : i32
    return %arg0, %arg1, %arg2 : i32, i32, i32
  }
}

</mosaic_0001>

<bundles_post_ra>
// kernel: _decode.1
= control target key start
LH: loop header
LB: loop body
LE: loop exit
PB: predicated region body
PF: predicated region fallthrough
CT: control target
= control target key end

     0   :  { %s1168_s0 = inlined_call_operand.vmem [shape: s32[2], index: 0, kind: input, shape index: {}]   ;;  %s1169_s1 = inlined_call_operand.vmem [shape: f32[2,128,32], index: 1, kind: input, shape index: {}, may-alias: {1,2}]   ;;  %s1170_s2 = inlined_call_operand.vmem [shape: f32[2,128,32], index: 2, kind: input, shape index: {}, may-alias: {1,2}]   ;;  %s1171_s3 = inlined_call_operand.vmem [shape: f32[2,128,128], index: 3, kind: output, shape index: {}]  }
   0x1   :  { %s8_s14 = sshll.u32 %s1168_s0, 4  ;;  %s9_s14 = int_to_ptr.vmem [resolvable:$true] %s8_s14 }
   0x2   :  { %s905_s15 = scalar_lea.vmem %s9_s14, 16  ;;  %p910_p1 = scmp.lt.s32.totalorder %s9_s14, %s9_s14 }
   0x3   :  { %p906_p0 = scmp.ne.s32.totalorder %s9_s14, %s905_s15  ;;  %p911_p2 = scmp.lt.s32.totalorder %s905_s15, %s905_s15 }
   0x5   :  { %p912_p3 = por %p911_p2, %p910_p1 }
   0x7   :  { %p913_p4 = pnand %p912_p3, %p906_p0 }
   0x9   :  { %916 = shalt.err (!%p913_p4)  }
   0xa   :  { %s943_s16 = smov [#allocation3]  }
   0xb   :  { %11 = dma.vmem_to_smem %s9_s14, 16, %s943_s16, [#allocation2] }
   0xc   :  { %929 = dma.done.wait [#allocation2], 16 }
   0xd   :  { %930 = vsyncadd [#allocation2], 4294967280 }
   0xe   :  { %13 = sfence }
   0xf   :  { %s968_s17 = smov 0   ;;  %s970_s18 = smov 0  }
  0x10   :  { %s972_s19 = smov 0  }
  0x11 LB: > { %s38_s0 = sadd.s32 1, %s937_s18  ;;  %p681_p5 = scmp.ge.s32.totalorder %s941_s19, 1  ;;  %s941_s19 = sphi %s972_s19, %s19_s19   ;;  %s937_s18 = sphi %s970_s18, %s1176_s18   ;;  %s933_s17 = sphi %s968_s17, %s1175_s17  }
  0x12   : > { %p40_p6 = scmp.ge.s32.totalorder %s38_s0, 2  ;;  %p166_p7 = scmp.lt.s32.totalorder %s941_s19, 3 }
  0x14   : > { %s1178_s0 = smov (%p40_p6, %s38_s0), 0  ;;  %p167_p8 = pnand %p681_p5, %p166_p7 }
  0x15   : > { %p209_p9 = scmp.lt.s32.totalorder (!%p167_p8), %s933_s17, 1  ;;  %s241_s20 = sld [smem:[#allocation3 + %s933_s17]] (!%p167_p8) }
  0x16   : > { %170 = sbr.rel (%p167_p8) target bundleno = 334 (0x14e), region = 28 }
  0x1b   : > { %p688_p10 = scmp.gt.s32.totalorder (!%p167_p8), %s241_s20, 0 }
  0x1d   : > { %s1180_s17 = smov (!%p209_p9, %s933_s17), 1  ;;  %p1001_p11 = pnand %p688_p10, %p688_p10 }
  0x1e   : > { %s724_s21 = sshll.u32 %s1180_s17, 7  ;;  %vm282_vm0 = vcmask (!%p1001_p11), 261120  }
  0x1f   : > { %s989_s24 = scalar_lea.vmem %s1169_s1, %s724_s21  ;;  %s994_s27 = scalar_lea.vmem %s1170_s2, %s724_s21  ;;  %vm1012_vm1 = vmpackc.low (!%p1001_p11), %vm282_vm0, %vm282_vm0 }
  0x20   : > { %s999_s30 = scalar_lea.vmem %s1171_s3, %s724_s21  ;;  %249 = sbr.rel (%p1001_p11) target bundleno = 325 (0x145), region = 32  ;;  %v266_v0 = vld [vmem:[%s994_s27] sm:$0xff] (!%p1001_p11)  ;;  %v267_v1 = vld [vmem:[%s994_s27 + $0x8] sm:$0xff] (!%p1001_p11)  ;;  %v268_v2 = vld [vmem:[%s994_s27 + $0x10] sm:$0xff] (!%p1001_p11) }
  0x21   : > { %v815_v3 = vpack.c.bf16 (!%p1001_p11), %v267_v1, %v266_v0  ;;  %v269_v5 = vld [vmem:[%s994_s27 + $0x18] sm:$0xff] (!%p1001_p11)  ;;  %v250_v7 = vld [vmem:[%s989_s24] sm:$0xff] (!%p1001_p11)  ;;  %v271_v9 = vld [vmem:[%s994_s27 + $0x28] sm:$0xff] (!%p1001_p11) }
  0x22   : > { %v821_v6 = vpack.c.bf16 (!%p1001_p11), %v269_v5, %v268_v2  ;;  %v270_v8 = vld [vmem:[%s994_s27 + $0x20] sm:$0xff] (!%p1001_p11)  ;;  %791 = vmatprep.mubr.msk.f32.mxu0 (!%p1001_p11), %vm282_vm0, %v250_v7  ;;  %v272_v12 = vld [vmem:[%s994_s27 + $0x30] sm:$0xff] (!%p1001_p11)  ;;  %v273_v13 = vld [vmem:[%s994_s27 + $0x38] sm:$0xff] (!%p1001_p11) }
  0x23   : > { %817 = vmatprep.subr.msk.bf16.mxu0 (!%p1001_p11), %vm1012_vm1, %v815_v3  ;;  %863 = vmatprep.subr.msk.bf16.mxu1 (!%p1001_p11), %vm1012_vm1, %v815_v3  ;;  %v258_v10 = vld [vmem:[%s989_s24 + $0x40] sm:$0xff] (!%p1001_p11)  ;;  %v827_v11 = vpack.c.bf16 (!%p1001_p11), %v271_v9, %v270_v8  ;;  %v833_v14 = vpack.c.bf16 (!%p1001_p11), %v273_v13, %v272_v12  ;;  %v275_v16 = vld [vmem:[%s994_s27 + $0x48] sm:$0xff] (!%p1001_p11)  ;;  %v276_v18 = vld [vmem:[%s994_s27 + $0x50] sm:$0xff] (!%p1001_p11) }
  0x24   : > { %820 = vmatpush3.bf16.xpose.msk.msra.mxu0 (!%p1001_p11), %vm1012_vm1, %v815_v3  ;;  %871 = vmatpush3.bf16.xpose.msk.msra.mxu1 (!%p1001_p11), %vm1012_vm1, %v815_v3  ;;  %v274_v15 = vld [vmem:[%s994_s27 + $0x40] sm:$0xff] (!%p1001_p11)  ;;  %v277_v19 = vld [vmem:[%s994_s27 + $0x58] sm:$0xff] (!%p1001_p11)  ;;  %v279_v22 = vld [vmem:[%s994_s27 + $0x68] sm:$0xff] (!%p1001_p11) }
  0x25   : > { %823 = vmatprep.subr.msk.bf16.mxu0 (!%p1001_p11), %vm1012_vm1, %v821_v6  ;;  %864 = vmatprep.subr.msk.bf16.mxu1 (!%p1001_p11), %vm1012_vm1, %v821_v6  ;;  %v839_v17 = vpack.c.bf16 (!%p1001_p11), %v275_v16, %v274_v15  ;;  %v845_v20 = vpack.c.bf16 (!%p1001_p11), %v277_v19, %v276_v18  ;;  %v278_v21 = vld [vmem:[%s994_s27 + $0x60] sm:$0xff] (!%p1001_p11)  ;;  %v280_v24 = vld [vmem:[%s994_s27 + $0x70] sm:$0xff] (!%p1001_p11)  ;;  %v281_v25 = vld [vmem:[%s994_s27 + $0x78] sm:$0xff] (!%p1001_p11) }
  0x26   : > { %803 = vmatprep.mubr.msk.f32.mxu1 (!%p1001_p11), %vm282_vm0, %v258_v10  ;;  %v851_v23 = vpack.c.bf16 (!%p1001_p11), %v279_v22, %v278_v21  ;;  %v857_v26 = vpack.c.bf16 (!%p1001_p11), %v281_v25, %v280_v24  ;;  %v251_v27 = vld [vmem:[%s989_s24 + $0x8] sm:$0xff] (!%p1001_p11)  ;;  %v252_v29 = vld [vmem:[%s989_s24 + $0x10] sm:$0xff] (!%p1001_p11)  ;;  %v253_v31 = vld [vmem:[%s989_s24 + $0x18] sm:$0xff] (!%p1001_p11) }
  0x27   : > { %v259_v28 = vld [vmem:[%s989_s24 + $0x48] sm:$0xff]  ;;  %v260_v30 = vld [vmem:[%s989_s24 + $0x50] sm:$0xff]  ;;  %v261_v32 = vld [vmem:[%s989_s24 + $0x58] sm:$0xff] }
  0x28   : > { %v254_v33 = vld [vmem:[%s989_s24 + $0x20] sm:$0xff]  ;;  %v255_v35 = vld [vmem:[%s989_s24 + $0x28] sm:$0xff]  ;;  %v256_v37 = vld [vmem:[%s989_s24 + $0x30] sm:$0xff] }
  0x29   : > { %v262_v34 = vld [vmem:[%s989_s24 + $0x60] sm:$0xff]  ;;  %v263_v36 = vld [vmem:[%s989_s24 + $0x68] sm:$0xff]  ;;  %v264_v38 = vld [vmem:[%s989_s24 + $0x70] sm:$0xff] }
  0x2a   : > { %v257_v39 = vld [vmem:[%s989_s24 + $0x38] sm:$0xff] }
  0x2b   : > { %v265_v40 = vld [vmem:[%s989_s24 + $0x78] sm:$0xff] }
  0x2c   : > { %826 = vmatpush3.bf16.xpose.msk.msra.mxu0 %vm1012_vm1, %v821_v6  ;;  %872 = vmatpush3.bf16.xpose.msk.msra.mxu1 %vm1012_vm1, %v821_v6 }
  0x2d   : > { %829 = vmatprep.subr.msk.bf16.mxu0 %vm1012_vm1, %v827_v11  ;;  %865 = vmatprep.subr.msk.bf16.mxu1 %vm1012_vm1, %v827_v11 }
  0x34   : > { %832 = vmatpush3.bf16.xpose.msk.msra.mxu0 %vm1012_vm1, %v827_v11  ;;  %873 = vmatpush3.bf16.xpose.msk.msra.mxu1 %vm1012_vm1, %v827_v11 }
  0x35   : > { %835 = vmatprep.subr.msk.bf16.mxu0 %vm1012_vm1, %v833_v14  ;;  %866 = vmatprep.subr.msk.bf16.mxu1 %vm1012_vm1, %v833_v14 }
  0x3c   : > { %838 = vmatpush3.bf16.xpose.msk.msra.mxu0 %vm1012_vm1, %v833_v14  ;;  %874 = vmatpush3.bf16.xpose.msk.msra.mxu1 %vm1012_vm1, %v833_v14 }
  0x3d   : > { %841 = vmatprep.subr.msk.bf16.mxu0 %vm1012_vm1, %v839_v17  ;;  %867 = vmatprep.subr.msk.bf16.mxu1 %vm1012_vm1, %v839_v17 }
  0x44   : > { %844 = vmatpush3.bf16.xpose.msk.msra.mxu0 %vm1012_vm1, %v839_v17  ;;  %875 = vmatpush3.bf16.xpose.msk.msra.mxu1 %vm1012_vm1, %v839_v17 }
  0x45   : > { %847 = vmatprep.subr.msk.bf16.mxu0 %vm1012_vm1, %v845_v20  ;;  %868 = vmatprep.subr.msk.bf16.mxu1 %vm1012_vm1, %v845_v20 }
  0x4c   : > { %850 = vmatpush3.bf16.xpose.msk.msra.mxu0 %vm1012_vm1, %v845_v20  ;;  %876 = vmatpush3.bf16.xpose.msk.msra.mxu1 %vm1012_vm1, %v845_v20 }
  0x4d   : > { %853 = vmatprep.subr.msk.bf16.mxu0 %vm1012_vm1, %v851_v23  ;;  %869 = vmatprep.subr.msk.bf16.mxu1 %vm1012_vm1, %v851_v23 }
  0x54   : > { %856 = vmatpush3.bf16.xpose.msk.msra.mxu0 %vm1012_vm1, %v851_v23  ;;  %877 = vmatpush3.bf16.xpose.msk.msra.mxu1 %vm1012_vm1, %v851_v23 }
  0x55   : > { %859 = vmatprep.subr.msk.bf16.mxu0 %vm1012_vm1, %v857_v26  ;;  %870 = vmatprep.subr.msk.bf16.mxu1 %vm1012_vm1, %v857_v26 }
  0x5c   : > { %862 = vmatpush3.bf16.xpose.msk.msra.mxu0 %vm1012_vm1, %v857_v26  ;;  %878 = vmatpush3.bf16.xpose.msk.msra.mxu1 %vm1012_vm1, %v857_v26 }
  0x63   : > { %792 = vmatmul.mubr.msk.f32.vlgmr.msra.gmra.mrb[0].mxu0 %vm282_vm0, %v251_v27  ;;  %804 = vmatmul.mubr.msk.f32.vlgmr.msra.gmra.mrb[0].mxu1 %vm282_vm0, %v259_v28 }
  0x64   : > { %794 = vmatprep.mubr.msk.f32.mxu0 %vm282_vm0, %v252_v29  ;;  %806 = vmatprep.mubr.msk.f32.mxu1 %vm282_vm0, %v260_v30 }
  0x67   : > { %795 = vmatmul.mubr.msk.f32.gmra.mrb[2].mxu0 %vm282_vm0, %v253_v31  ;;  %807 = vmatmul.mubr.msk.f32.gmra.mrb[2].mxu1 %vm282_vm0, %v261_v32 }
  0x68   : > { %797 = vmatprep.mubr.msk.f32.mxu0 %vm282_vm0, %v254_v33  ;;  %809 = vmatprep.mubr.msk.f32.mxu1 %vm282_vm0, %v262_v34 }
  0x6b   : > { %798 = vmatmul.mubr.msk.f32.gmra.mrb[4].mxu0 %vm282_vm0, %v255_v35  ;;  %810 = vmatmul.mubr.msk.f32.gmra.mrb[4].mxu1 %vm282_vm0, %v263_v36 }
  0x6c   : > { %800 = vmatprep.mubr.msk.f32.mxu0 %vm282_vm0, %v256_v37  ;;  %812 = vmatprep.mubr.msk.f32.mxu1 %vm282_vm0, %v264_v38 }
  0x6f   : > { %801 = vmatmul.mubr.msk.f32.gmra.mrb[6].mxu0 %vm282_vm0, %v257_v39  ;;  %813 = vmatmul.mubr.msk.f32.gmra.mrb[6].mxu1 %vm282_vm0, %v265_v40 }
 0x136   : > { %v793_v41 = vpop.f32.mrb[0].mxu0  ;;  %v805_v42 = vpop.f32.mrb[0].mxu1 }
 0x137   : > { %525 = vst [vmem:[%s999_s30 + $0x8] sm:$0xff] %v793_v41  ;;  %533 = vst [vmem:[%s999_s30 + $0x48] sm:$0xff] %v805_v42  ;;  %v445_v43 = vpop.f32.mrb[1].mxu0  ;;  %v485_v44 = vpop.f32.mrb[1].mxu1 }
 0x138   : > { %524 = vst [vmem:[%s999_s30] sm:$0xff] %v445_v43  ;;  %532 = vst [vmem:[%s999_s30 + $0x40] sm:$0xff] %v485_v44 }
 0x13a   : > { %v796_v45 = vpop.f32.mrb[2].mxu0  ;;  %v808_v46 = vpop.f32.mrb[2].mxu1 }
 0x13b   : > { %527 = vst [vmem:[%s999_s30 + $0x18] sm:$0xff] %v796_v45  ;;  %535 = vst [vmem:[%s999_s30 + $0x58] sm:$0xff] %v808_v46  ;;  %v455_v47 = vpop.f32.mrb[3].mxu0  ;;  %v495_v48 = vpop.f32.mrb[3].mxu1 }
 0x13c   : > { %526 = vst [vmem:[%s999_s30 + $0x10] sm:$0xff] %v455_v47  ;;  %534 = vst [vmem:[%s999_s30 + $0x50] sm:$0xff] %v495_v48 }
 0x13e   : > { %v799_v49 = vpop.f32.mrb[4].mxu0  ;;  %v811_v50 = vpop.f32.mrb[4].mxu1 }
 0x13f   : > { %529 = vst [vmem:[%s999_s30 + $0x28] sm:$0xff] %v799_v49  ;;  %537 = vst [vmem:[%s999_s30 + $0x68] sm:$0xff] %v811_v50  ;;  %v465_v51 = vpop.f32.mrb[5].mxu0  ;;  %v505_v52 = vpop.f32.mrb[5].mxu1 }
 0x140   : > { %528 = vst [vmem:[%s999_s30 + $0x20] sm:$0xff] %v465_v51  ;;  %536 = vst [vmem:[%s999_s30 + $0x60] sm:$0xff] %v505_v52 }
 0x142   : > { %v802_v53 = vpop.f32.mrb[6].mxu0  ;;  %v814_v54 = vpop.f32.mrb[6].mxu1 }
 0x143   : > { %531 = vst [vmem:[%s999_s30 + $0x38] sm:$0xff] %v802_v53  ;;  %539 = vst [vmem:[%s999_s30 + $0x78] sm:$0xff] %v814_v54  ;;  %v475_v55 = vpop.f32.mrb[7].mxu0  ;;  %v515_v56 = vpop.f32.mrb[7].mxu1 }
 0x144   : > { %530 = vst [vmem:[%s999_s30 + $0x30] sm:$0xff] %v475_v55  ;;  %538 = vst [vmem:[%s999_s30 + $0x70] sm:$0xff] %v515_v56 }
 0x145 PF: > { %542 = sbr.rel (!%p1001_p11) target bundleno = 334 (0x14e), region = 36  ;;  %v944_v57 = vmov (%p1001_p11), 0.0  }
 0x146   : > { %543 = vst [vmem:[%s999_s30] sm:$0xff] (%p1001_p11), %v944_v57  ;;  %544 = vst [vmem:[%s999_s30 + $0x8] sm:$0xff] (%p1001_p11), %v944_v57 }
 0x147   : > { %545 = vst [vmem:[%s999_s30 + $0x10] sm:$0xff] (%p1001_p11), %v944_v57  ;;  %546 = vst [vmem:[%s999_s30 + $0x18] sm:$0xff] (%p1001_p11), %v944_v57 }
 0x148   : > { %547 = vst [vmem:[%s999_s30 + $0x20] sm:$0xff] (%p1001_p11), %v944_v57  ;;  %548 = vst [vmem:[%s999_s30 + $0x28] sm:$0xff] (%p1001_p11), %v944_v57 }
 0x149   : > { %549 = vst [vmem:[%s999_s30 + $0x30] sm:$0xff] (%p1001_p11), %v944_v57  ;;  %550 = vst [vmem:[%s999_s30 + $0x38] sm:$0xff] (%p1001_p11), %v944_v57 }
 0x14a   : > { %551 = vst [vmem:[%s999_s30 + $0x40] sm:$0xff] (%p1001_p11), %v944_v57  ;;  %552 = vst [vmem:[%s999_s30 + $0x48] sm:$0xff] (%p1001_p11), %v944_v57 }
 0x14b   : > { %553 = vst [vmem:[%s999_s30 + $0x50] sm:$0xff] (%p1001_p11), %v944_v57  ;;  %554 = vst [vmem:[%s999_s30 + $0x58] sm:$0xff] (%p1001_p11), %v944_v57 }
 0x14c   : > { %555 = vst [vmem:[%s999_s30 + $0x60] sm:$0xff] %v944_v57  ;;  %556 = vst [vmem:[%s999_s30 + $0x68] sm:$0xff] %v944_v57 }
 0x14d   : > { %557 = vst [vmem:[%s999_s30 + $0x70] sm:$0xff] %v944_v57  ;;  %558 = vst [vmem:[%s999_s30 + $0x78] sm:$0xff] %v944_v57 }
 0x14e PF: > { %s19_s19 = sadd.s32 1, %s941_s19   ;;  %s1175_s17 = smov %s937_s18 }
 0x14f   : > { %p16_p12 = scmp.ge.s32.totalorder %s19_s19, 4   ;;  %s1176_s18 = smov %s1178_s0 }
 0x151   :  { %18 = sbr.rel (!%p16_p12) target bundleno = 17 (0x11), region = 69 }

</bundles_post_ra>
